<compile_context>
chip_gen: v7x
topology: tpu7x:2x2x1
jax: 0.10.0
libtpu: 0.0.40
codegen_flags: <defaults>
</compile_context>

<pallas_src>
import functools

import jax
import jax.numpy as jnp
from jax.experimental import pallas as pl
from jax.experimental.pallas import tpu as pltpu

# ----------------------------- configuration --------------------------------
INPUT_DIM = 2      # cat([t, x], dim=-1) with t, x each (batch, 1)
HIDDEN_DIM = 32    # BackboneNet_hidden_dim
OUTPUT_DIM = 1     # BackboneNet_output_dim
LAYERS_NUM = 3     # BackboneNet_layers_num
BATCH = 16
BATCH_TILE = 2048  # lane tile for realistic collocation-point batches
LANE = 128


def _default_compute_dtype():
    """bf16 activations on chips with bf16 VPU/EUP (v6e/v7x), f32 otherwise."""
    try:
        kind = jax.devices()[0].device_kind.lower()
    except Exception:  # pragma: no cover - defensive
        return jnp.float32
    if "v6" in kind or "v7" in kind:
        return jnp.bfloat16
    return jnp.float32


# ------------------------------ Pallas kernel --------------------------------
def pinn_fwd_kernel(tx_ref, w_t_ref, w_x_ref, b_in_ref,
                    w_hid_ref, b_hid_ref, w_out_ref, o_ref, *, layers_num):
    # tx_ref is a (2, BT) tile: row 0 = t, row 1 = x (single DMA per step).
    t_row = tx_ref[0:1, :]                        # (1, BT)
    x_row = tx_ref[1:2, :]                        # (1, BT)

    # Input layer as VPU broadcast FMAs (a K=2 MXU matmul is pure padding):
    #   h[j, b] = tanh(W_in[0, j] * t[b] + W_in[1, j] * x[b] + b_in[j])
    h = jnp.tanh(w_t_ref[...] * t_row             # (H,1)*(1,BT) -> (H,BT)
                 + w_x_ref[...] * x_row
                 + b_in_ref[...])                 # (H,1) broadcast over lanes

    # Hidden MLP blocks, static unroll (L small; h stays resident).
    # Transposed layout: h_new = tanh(W^T @ h + b^T), all lane-dense.
    # MXU accumulates in f32; cast back to the compute dtype before tanh so the
    # EUP runs at bf16 throughput on v6e/v7x (no-op cast on the f32 path).
    for l in range(layers_num):
        z = jnp.dot(w_hid_ref[l], h,
                    preferred_element_type=jnp.float32).astype(h.dtype)
        h = jnp.tanh(z + b_hid_ref[l])

    # Output layer (no bias): (out_dim, H) @ (H, BT) -> lane-dense (out_dim, BT)
    o_ref[...] = jnp.dot(
        w_out_ref[...], h, preferred_element_type=jnp.float32
    ).astype(o_ref.dtype)


def pinn_forward(t, x, params, *, batch_tile=BATCH_TILE, compute_dtype=None):
    """PINN forward pass: backbone(cat([t, x], -1)). t, x: (B, 1) -> (B, out)."""
    if compute_dtype is None:
        compute_dtype = _default_compute_dtype()

    w_in, b_in, w_hid, b_hid, w_out = params
    B = t.shape[0]
    H = w_in.shape[1]
    L = w_hid.shape[0]
    out_dim = w_out.shape[1]
    out_dtype = t.dtype

    # ---- transpose weights to the lane-dense layout (tiny, one-time) ----
    w_t_col = w_in[0:1, :].T.astype(compute_dtype)                 # (H, 1)
    w_x_col = w_in[1:2, :].T.astype(compute_dtype)                 # (H, 1)
    b_in_t = b_in.reshape(1, H).T.astype(compute_dtype)            # (H, 1)
    w_hid_t = jnp.transpose(w_hid, (0, 2, 1)).astype(compute_dtype)   # (L, H, H)
    b_hid_t = jnp.transpose(b_hid, (0, 2, 1)).astype(compute_dtype)   # (L, H, 1)
    w_out_t = w_out.T.astype(compute_dtype)                        # (out_dim, H)

    # ---- batch on the 128-lane axis; pick tile + (small) tail padding ----
    bt = min(batch_tile, pl.cdiv(B, LANE) * LANE)
    bt = max(LANE, (bt // LANE) * LANE)
    # Prefer >= 2 grid steps so multi-TC chips (v7x) can shard the parallel
    # axis; a no-op for the tiny demo batch (single 128-lane tile).
    if pl.cdiv(B, bt) < 2 and B > LANE:
        bt = max(LANE, ((pl.cdiv(B, LANE) * LANE) // 2 // LANE) * LANE)
    b_pad = pl.cdiv(B, bt) * bt

    # Stack t/x into one (2, B) row array; pad only the ragged tail (no full
    # zeros+scatter pass over the inputs).
    tx = jnp.concatenate(
        [t.reshape(1, B), x.reshape(1, B)], axis=0).astype(compute_dtype)
    if b_pad != B:
        tx = jnp.pad(tx, ((0, 0), (0, b_pad - B)))

    kernel = functools.partial(pinn_fwd_kernel, layers_num=L)

    out_t = pl.pallas_call(
        kernel,
        out_shape=jax.ShapeDtypeStruct((out_dim, b_pad), out_dtype),
        grid_spec=pltpu.PrefetchScalarGridSpec(
            num_scalar_prefetch=0,
            grid=(b_pad // bt,),
            in_specs=[
                pl.BlockSpec((2, bt), lambda i: (0, i)),         # [t; x] rows
                pl.BlockSpec((H, 1), lambda i: (0, 0)),          # W_in col (t)
                pl.BlockSpec((H, 1), lambda i: (0, 0)),          # W_in col (x)
                pl.BlockSpec((H, 1), lambda i: (0, 0)),          # b_in^T
                pl.BlockSpec((L, H, H), lambda i: (0, 0, 0)),    # W_hid^T
                pl.BlockSpec((L, H, 1), lambda i: (0, 0, 0)),    # b_hid^T
                pl.BlockSpec((out_dim, H), lambda i: (0, 0)),    # W_out^T
            ],
            out_specs=pl.BlockSpec((out_dim, bt), lambda i: (0, i)),
        ),
        compiler_params=pltpu.CompilerParams(
            dimension_semantics=("parallel",)),
    )(tx, w_t_col, w_x_col, b_in_t, w_hid_t, b_hid_t, w_out_t)

    # strip padding, return row-major (B, out_dim)
    return out_t[:, :B].T


# ------------------------- deterministic parameters ---------------------------
def init_params(key):
    """Deterministic init mimicking nn.Linear default (uniform +-1/sqrt(fan_in))."""
    ks = jax.random.split(key, 7)

    def lin(k, fan_in, fan_out):
        bound = 1.0 / jnp.sqrt(jnp.float32(fan_in))
        return jax.random.uniform(k, (fan_in, fan_out), jnp.float32, -bound, bound)

    w_in = lin(ks[0], INPUT_DIM, HIDDEN_DIM)                       # (2, H)
    b_in = lin(ks[1], INPUT_DIM, HIDDEN_DIM)[:1, :]                # (1, H)
    w_hid = jnp.stack(
        [lin(jax.random.fold_in(ks[2], l), HIDDEN_DIM, HIDDEN_DIM)
         for l in range(LAYERS_NUM)], axis=0)                      # (L, H, H)
    b_hid = jnp.stack(
        [lin(jax.random.fold_in(ks[3], l), HIDDEN_DIM, HIDDEN_DIM)[:1, :]
         for l in range(LAYERS_NUM)], axis=0)                      # (L, 1, H)
    w_out = lin(ks[4], HIDDEN_DIM, OUTPUT_DIM)                     # (H, 1)
    alpha = 0.01 * jax.random.normal(ks[5], (1,), jnp.float32)     # unused in fwd
    return (w_in, b_in, w_hid, b_hid, w_out), alpha


def reference_forward(t, x, params):
    """Pure-JAX reference (row layout, matches the PyTorch module)."""
    w_in, b_in, w_hid, b_hid, w_out = params
    h = jnp.tanh(jnp.concatenate([t, x], axis=-1) @ w_in + b_in)
    for l in range(w_hid.shape[0]):
        h = jnp.tanh(h @ w_hid[l] + b_hid[l])
    return h @ w_out


# ---------------------------------- main --------------------------------------
if __name__ == "__main__":
    key = jax.random.PRNGKey(0)
    k_params, k_t, k_x = jax.random.split(key, 3)

    params, alpha = init_params(k_params)
    t = jax.random.normal(k_t, (BATCH, 1), jnp.float32)
    x = jax.random.normal(k_x, (BATCH, 1), jnp.float32)

    compute_dtype = _default_compute_dtype()
    out = pinn_forward(t, x, params, compute_dtype=compute_dtype)
    out = jax.block_until_ready(out)

    ref = reference_forward(t, x, params)
    assert out.shape == (BATCH, OUTPUT_DIM)
    if compute_dtype == jnp.bfloat16:
        atol, rtol = 5e-2, 5e-2   # bf16 activation path (v6e/v7x)
    else:
        atol, rtol = 1e-5, 1e-4   # f32 path (v5e and others)
    assert jnp.allclose(out, ref, atol=atol, rtol=rtol), "mismatch vs reference"

    print("KERNEL_OK")
</pallas_src>

<mosaic_0001>
module attributes {stable_mosaic.version = 11 : i64} {
  func.func @pinn_fwd_kernel(%arg0: i32, %arg1: memref<2x128xf32, #tpu.memory_space<vmem>>, %arg2: memref<32x1xf32, #tpu.memory_space<vmem>>, %arg3: memref<32x1xf32, #tpu.memory_space<vmem>>, %arg4: memref<32x1xf32, #tpu.memory_space<vmem>>, %arg5: memref<3x32x32xf32, #tpu.memory_space<vmem>>, %arg6: memref<3x32x1xf32, #tpu.memory_space<vmem>>, %arg7: memref<1x32xf32, #tpu.memory_space<vmem>>, %arg8: memref<1x128xf32, #tpu.memory_space<vmem>>) attributes {dimension_semantics = [#tpu.dimension_semantics<parallel>], iteration_bounds = array<i64: 1>, scalar_prefetch = 0 : i64, scratch_operands = 0 : i64, tpu.core_type = #tpu.core_type<tc>, window_params = [{transform_indices = @transform_0, window_bounds = array<i64: 2, 128>}, {pipeline_mode = #tpu.pipeline_mode<synchronous>, transform_indices = @transform_1, window_bounds = array<i64: 32, 1>}, {pipeline_mode = #tpu.pipeline_mode<synchronous>, transform_indices = @transform_2, window_bounds = array<i64: 32, 1>}, {pipeline_mode = #tpu.pipeline_mode<synchronous>, transform_indices = @transform_3, window_bounds = array<i64: 32, 1>}, {pipeline_mode = #tpu.pipeline_mode<synchronous>, transform_indices = @transform_4, window_bounds = array<i64: 3, 32, 32>}, {pipeline_mode = #tpu.pipeline_mode<synchronous>, transform_indices = @transform_5, window_bounds = array<i64: 3, 32, 1>}, {pipeline_mode = #tpu.pipeline_mode<synchronous>, transform_indices = @transform_6, window_bounds = array<i64: 1, 32>}, {transform_indices = @transform_7, window_bounds = array<i64: 1, 128>}]} {
    %c0 = arith.constant 0 : index
    %c0_0 = arith.constant 0 : index
    %0 = vector.load %arg1[%c0, %c0_0] : memref<2x128xf32, #tpu.memory_space<vmem>>, vector<1x128xf32>
    %c1 = arith.constant 1 : index
    %c0_1 = arith.constant 0 : index
    %1 = vector.load %arg1[%c1, %c0_1] : memref<2x128xf32, #tpu.memory_space<vmem>>, vector<1x128xf32>
    %c0_2 = arith.constant 0 : index
    %c0_3 = arith.constant 0 : index
    %2 = vector.load %arg2[%c0_2, %c0_3] : memref<32x1xf32, #tpu.memory_space<vmem>>, vector<32x1xf32>
    %3 = vector.broadcast %2 : vector<32x1xf32> to vector<32x128xf32>
    %4 = vector.broadcast %0 : vector<1x128xf32> to vector<32x128xf32>
    %5 = arith.mulf %3, %4 : vector<32x128xf32>
    %c0_4 = arith.constant 0 : index
    %c0_5 = arith.constant 0 : index
    %6 = vector.load %arg3[%c0_4, %c0_5] : memref<32x1xf32, #tpu.memory_space<vmem>>, vector<32x1xf32>
    %7 = vector.broadcast %6 : vector<32x1xf32> to vector<32x128xf32>
    %8 = vector.broadcast %1 : vector<1x128xf32> to vector<32x128xf32>
    %9 = arith.mulf %7, %8 : vector<32x128xf32>
    %10 = arith.addf %5, %9 : vector<32x128xf32>
    %c0_6 = arith.constant 0 : index
    %c0_7 = arith.constant 0 : index
    %11 = vector.load %arg4[%c0_6, %c0_7] : memref<32x1xf32, #tpu.memory_space<vmem>>, vector<32x1xf32>
    %12 = vector.broadcast %11 : vector<32x1xf32> to vector<32x128xf32>
    %13 = arith.addf %10, %12 : vector<32x128xf32>
    %14 = math.tanh %13 : vector<32x128xf32>
    %c0_8 = arith.constant 0 : index
    %c0_9 = arith.constant 0 : index
    %c0_10 = arith.constant 0 : index
    %15 = vector.load %arg5[%c0_8, %c0_9, %c0_10] : memref<3x32x32xf32, #tpu.memory_space<vmem>>, vector<1x32x32xf32>
    %16 = vector.shape_cast %15 : vector<1x32x32xf32> to vector<32x32xf32>
    %cst = arith.constant dense<0.000000e+00> : vector<32x128xf32>
    %17 = tpu.matmul %16, %14, %cst {dimension_numbers = #tpu.dot_dimension_numbers<[1], [0], [0], [1], [0, 0, 1, 1], [], []>} : vector<32x32xf32>, vector<32x128xf32>, vector<32x128xf32> -> vector<32x128xf32>
    %c0_11 = arith.constant 0 : index
    %c0_12 = arith.constant 0 : index
    %c0_13 = arith.constant 0 : index
    %18 = vector.load %arg6[%c0_11, %c0_12, %c0_13] : memref<3x32x1xf32, #tpu.memory_space<vmem>>, vector<1x32x1xf32>
    %19 = vector.shape_cast %18 : vector<1x32x1xf32> to vector<32x1xf32>
    %20 = vector.broadcast %19 : vector<32x1xf32> to vector<32x128xf32>
    %21 = arith.addf %17, %20 : vector<32x128xf32>
    %22 = math.tanh %21 : vector<32x128xf32>
    %c1_14 = arith.constant 1 : index
    %c0_15 = arith.constant 0 : index
    %c0_16 = arith.constant 0 : index
    %23 = vector.load %arg5[%c1_14, %c0_15, %c0_16] : memref<3x32x32xf32, #tpu.memory_space<vmem>>, vector<1x32x32xf32>
    %24 = vector.shape_cast %23 : vector<1x32x32xf32> to vector<32x32xf32>
    %cst_17 = arith.constant dense<0.000000e+00> : vector<32x128xf32>
    %25 = tpu.matmul %24, %22, %cst_17 {dimension_numbers = #tpu.dot_dimension_numbers<[1], [0], [0], [1], [0, 0, 1, 1], [], []>} : vector<32x32xf32>, vector<32x128xf32>, vector<32x128xf32> -> vector<32x128xf32>
    %c1_18 = arith.constant 1 : index
    %c0_19 = arith.constant 0 : index
    %c0_20 = arith.constant 0 : index
    %26 = vector.load %arg6[%c1_18, %c0_19, %c0_20] : memref<3x32x1xf32, #tpu.memory_space<vmem>>, vector<1x32x1xf32>
    %27 = vector.shape_cast %26 : vector<1x32x1xf32> to vector<32x1xf32>
    %28 = vector.broadcast %27 : vector<32x1xf32> to vector<32x128xf32>
    %29 = arith.addf %25, %28 : vector<32x128xf32>
    %30 = math.tanh %29 : vector<32x128xf32>
    %c2 = arith.constant 2 : index
    %c0_21 = arith.constant 0 : index
    %c0_22 = arith.constant 0 : index
    %31 = vector.load %arg5[%c2, %c0_21, %c0_22] : memref<3x32x32xf32, #tpu.memory_space<vmem>>, vector<1x32x32xf32>
    %32 = vector.shape_cast %31 : vector<1x32x32xf32> to vector<32x32xf32>
    %cst_23 = arith.constant dense<0.000000e+00> : vector<32x128xf32>
    %33 = tpu.matmul %32, %30, %cst_23 {dimension_numbers = #tpu.dot_dimension_numbers<[1], [0], [0], [1], [0, 0, 1, 1], [], []>} : vector<32x32xf32>, vector<32x128xf32>, vector<32x128xf32> -> vector<32x128xf32>
    %c2_24 = arith.constant 2 : index
    %c0_25 = arith.constant 0 : index
    %c0_26 = arith.constant 0 : index
    %34 = vector.load %arg6[%c2_24, %c0_25, %c0_26] : memref<3x32x1xf32, #tpu.memory_space<vmem>>, vector<1x32x1xf32>
    %35 = vector.shape_cast %34 : vector<1x32x1xf32> to vector<32x1xf32>
    %36 = vector.broadcast %35 : vector<32x1xf32> to vector<32x128xf32>
    %37 = arith.addf %33, %36 : vector<32x128xf32>
    %38 = math.tanh %37 : vector<32x128xf32>
    %c0_27 = arith.constant 0 : index
    %c0_28 = arith.constant 0 : index
    %39 = vector.load %arg7[%c0_27, %c0_28] : memref<1x32xf32, #tpu.memory_space<vmem>>, vector<1x32xf32>
    %cst_29 = arith.constant dense<0.000000e+00> : vector<1x128xf32>
    %40 = tpu.matmul %39, %38, %cst_29 {dimension_numbers = #tpu.dot_dimension_numbers<[1], [0], [0], [1], [0, 0, 1, 1], [], []>} : vector<1x32xf32>, vector<32x128xf32>, vector<1x128xf32> -> vector<1x128xf32>
    %c0_30 = arith.constant 0 : index
    %c0_31 = arith.constant 0 : index
    %41 = vector.load %arg8[%c0_30, %c0_31] : memref<1x128xf32, #tpu.memory_space<vmem>>, vector<1x128xf32>
    tpu.vector_store %arg8[%c0_30, %c0_31], %40 {strides = array<i32>} : memref<1x128xf32, #tpu.memory_space<vmem>>, vector<1x128xf32>,
    return
  }
  func.func @transform_0(%arg0: i32) -> (i32, i32) {
    %c0_i32 = arith.constant 0 : i32
    %c0_i32_0 = arith.constant 0 : i32
    return %c0_i32, %arg0 : i32, i32
  }
  func.func @transform_1(%arg0: i32) -> (i32, i32) {
    %c0_i32 = arith.constant 0 : i32
    %c0_i32_0 = arith.constant 0 : i32
    %c0_i32_1 = arith.constant 0 : i32
    return %c0_i32, %c0_i32_0 : i32, i32
  }
  func.func @transform_2(%arg0: i32) -> (i32, i32) {
    %c0_i32 = arith.constant 0 : i32
    %c0_i32_0 = arith.constant 0 : i32
    %c0_i32_1 = arith.constant 0 : i32
    return %c0_i32, %c0_i32_0 : i32, i32
  }
  func.func @transform_3(%arg0: i32) -> (i32, i32) {
    %c0_i32 = arith.constant 0 : i32
    %c0_i32_0 = arith.constant 0 : i32
    %c0_i32_1 = arith.constant 0 : i32
    return %c0_i32, %c0_i32_0 : i32, i32
  }
  func.func @transform_4(%arg0: i32) -> (i32, i32, i32) {
    %c0_i32 = arith.constant 0 : i32
    %c0_i32_0 = arith.constant 0 : i32
    %c0_i32_1 = arith.constant 0 : i32
    %c0_i32_2 = arith.constant 0 : i32
    return %c0_i32, %c0_i32_0, %c0_i32_1 : i32, i32, i32
  }
  func.func @transform_5(%arg0: i32) -> (i32, i32, i32) {
    %c0_i32 = arith.constant 0 : i32
    %c0_i32_0 = arith.constant 0 : i32
    %c0_i32_1 = arith.constant 0 : i32
    %c0_i32_2 = arith.constant 0 : i32
    return %c0_i32, %c0_i32_0, %c0_i32_1 : i32, i32, i32
  }
  func.func @transform_6(%arg0: i32) -> (i32, i32) {
    %c0_i32 = arith.constant 0 : i32
    %c0_i32_0 = arith.constant 0 : i32
    %c0_i32_1 = arith.constant 0 : i32
    return %c0_i32, %c0_i32_0 : i32, i32
  }
  func.func @transform_7(%arg0: i32) -> (i32, i32) {
    %c0_i32 = arith.constant 0 : i32
    %c0_i32_0 = arith.constant 0 : i32
    return %c0_i32, %arg0 : i32, i32
  }
}

</mosaic_0001>

<bundles_post_ra>
// kernel: tpu_custom_call.1
= control target key start
LH: loop header
LB: loop body
LE: loop exit
PB: predicated region body
PF: predicated region fallthrough
CT: control target
= control target key end

     0   :  { %v816_v2 = vmov 0   ;;  %s1003_s0 = inlined_call_operand.vmem [shape: f32[2,128], index: 0, kind: input, shape index: {}]   ;;  %s1004_s1 = inlined_call_operand.vmem [shape: f32[32,1], index: 1, kind: input, shape index: {}]   ;;  %s1005_s2 = inlined_call_operand.vmem [shape: f32[32,1], index: 2, kind: input, shape index: {}]   ;;  %s1006_s3 = inlined_call_operand.vmem [shape: f32[32,1], index: 3, kind: input, shape index: {}]   ;;  %s1007_s4 = inlined_call_operand.vmem [shape: f32[3,32,32], index: 4, kind: input, shape index: {}]   ;;  %s1008_s5 = inlined_call_operand.vmem [shape: f32[3,32,1], index: 5, kind: input, shape index: {}]   ;;  %s1009_s6 = inlined_call_operand.vmem [shape: f32[1,32], index: 6, kind: input, shape index: {}]   ;;  %s1010_s7 = inlined_call_operand.hbm [shape: f32[1,128], index: 7, kind: output, shape index: {}]  }
   0x1   :  { %v61_v0 = vld [vmem:[%s1005_s2] sm:$0xff]  ;;  %759 = vset.pattern.permute.xlu1 %v816_v2  ;;  %758 = vset.pattern.permute.xlu0 %v816_v2  ;;  %v62_v3 = vld [vmem:[%s1005_s2 + $0x8] sm:$0xff]  ;;  %v32_v5 = vld [vmem:[%s1004_s1 + $0x18] sm:$0xff] }
   0x2   :  { %v29_v1 = vld [vmem:[%s1004_s1] sm:$0xff]  ;;  %67 = vperm.xlu1 %759, %v61_v0   ;;  %v30_v4 = vld [vmem:[%s1004_s1 + $0x8] sm:$0xff]  ;;  %v31_v6 = vld [vmem:[%s1004_s1 + $0x10] sm:$0xff] }
   0x3   :  { %35 = vperm.xlu0 %758, %v29_v1  }
   0x6   :  { %72 = vperm.xlu1 %759, %v62_v3  }
   0x7   :  { %40 = vperm.xlu0 %758, %v30_v4  }
   0x8   :  { %12 = vsyncpa [#allocation3], 0  ;;  %v64_v7 = vld [vmem:[%s1005_s2 + $0x18] sm:$0xff]  ;;  %v63_v8 = vld [vmem:[%s1005_s2 + $0x10] sm:$0xff]  ;;  %vm157_vm0 = vcmask 261120   ;;  %vm818_vm1 = vmmov 0  }
   0x9   :  { %v98_v9 = vld [vmem:[%s1006_s3 + $0x8] sm:$0xff]  ;;  %v97_v10 = vld [vmem:[%s1006_s3] sm:$0xff]  ;;  %v100_v11 = vld [vmem:[%s1006_s3 + $0x18] sm:$0xff]  ;;  %s820_s23 = smov [#allocation2]  }
   0xa   :  { %50 = vperm.xlu1 %759, %v32_v5   ;;  %v99_v12 = vld [vmem:[%s1006_s3 + $0x10] sm:$0xff]  ;;  %v134_v13 = vld [vmem:[%s1008_s5 + $0x8] sm:$0xff]  ;;  %v133_v14 = vld [vmem:[%s1008_s5] sm:$0xff]  ;;  %s602_s2 = sshll.u32 %s820_s23, 4  ;;  %s603_s2 = int_to_ptr.vmem [resolvable:$true] %s602_s2 }
   0xb   :  { %45 = vperm.xlu0 %758, %v31_v6   ;;  %v136_v15 = vld [vmem:[%s1008_s5 + $0x18] sm:$0xff]  ;;  %v135_v16 = vld [vmem:[%s1008_s5 + $0x10] sm:$0xff]  ;;  %v621_v17 = vld [vmem:[%s1008_s5 + $0x28] sm:$0xff]  ;;  %s792_s24 = scalar_lea.vmem %s603_s2, 16  ;;  %s796_s25 = scalar_lea.vmem %s603_s2, 32 }
   0xc   :  { %v620_v18 = vld [vmem:[%s1008_s5 + $0x20] sm:$0xff]  ;;  %v623_v19 = vld [vmem:[%s1008_s5 + $0x38] sm:$0xff]  ;;  %v622_v20 = vld [vmem:[%s1008_s5 + $0x30] sm:$0xff]  ;;  %p793_p0 = scmp.ne.s32.totalorder %s603_s2, %s792_s24  ;;  %p797_p1 = scmp.lt.s32.totalorder %s603_s2, %s603_s2 }
   0xd   :  { %v633_v21 = vld [vmem:[%s1008_s5 + $0x48] sm:$0xff]  ;;  %v632_v22 = vld [vmem:[%s1008_s5 + $0x40] sm:$0xff]  ;;  %v635_v24 = vld [vmem:[%s1008_s5 + $0x58] sm:$0xff]  ;;  %p798_p2 = scmp.lt.s32.totalorder %s796_s25, %s792_s24 }
   0xe   :  { %82 = vperm.xlu1 %759, %v64_v7   ;;  %v129_v23 = vld [vmem:[%s1007_s4] sm:$0xff]  ;;  %v634_v25 = vld [vmem:[%s1008_s5 + $0x50] sm:$0xff]  ;;  %v130_v62 = vld [vmem:[%s1007_s4 + $0x8] sm:$0xff] }
   0xf   :  { %77 = vperm.xlu0 %758, %v63_v8   ;;  %678 = vmatprep.mubr.msk.f32.mxu0 %vm157_vm0, %v129_v23  ;;  %v611_v30 = vld [vmem:[%s1003_s0 + $0x1] ss:$0 sm:$0xff]  ;;  %v610_v31 = vld [vmem:[%s1003_s0] ss:$0 sm:$0xff]  ;;  %v131_v63 = vld [vmem:[%s1007_s4 + $0x10] sm:$0xff]  ;;  %p799_p3 = por %p798_p2, %p797_p1 }
  0x10   :  { %v132_v0 = vld [vmem:[%s1007_s4 + $0x18] sm:$0xff]  ;;  %v616_v1 = vld [vmem:[%s1007_s4 + $0x20] sm:$0xff] }
  0x11   :  { %692 = vmatprep.mubr.msk.f32.mxu1 %vm157_vm0, %v616_v1  ;;  %v628_v23 = vld [vmem:[%s1007_s4 + $0x40] sm:$0xff]  ;;  %p800_p4 = pnand %p799_p3, %p793_p0 }
  0x12   :  { %108 = vperm.xlu1 %759, %v98_v9   ;;  %v521_v1 = vld [vmem:[%s1009_s6] sm:$0x1] }
  0x13   :  { %103 = vperm.xlu0 %758, %v97_v10  }
  0x16   :  { %118 = vperm.xlu1 %759, %v100_v11  }
  0x17   :  { %113 = vperm.xlu0 %758, %v99_v12  }
  0x1a   :  { %144 = vperm.xlu1 %759, %v134_v13  }
  0x1b   :  { %139 = vperm.xlu0 %758, %v133_v14  }
  0x1e   :  { %154 = vperm.xlu1 %759, %v136_v15  }
  0x1f   :  { %149 = vperm.xlu0 %758, %v135_v16  }
  0x22   :  { %276 = vperm.xlu1 %759, %v621_v17  }
  0x23   :  { %271 = vperm.xlu0 %758, %v620_v18  }
  0x26   :  { %286 = vperm.xlu1 %759, %v623_v19  }
  0x27   :  { %281 = vperm.xlu0 %758, %v622_v20   ;;  %v617_v20 = vld [vmem:[%s1007_s4 + $0x28] sm:$0xff] }
  0x2a   :  { %407 = vperm.xlu1 %759, %v633_v21   ;;  %v618_v21 = vld [vmem:[%s1007_s4 + $0x30] sm:$0xff] }
  0x2b   :  { %402 = vperm.xlu0 %758, %v632_v22   ;;  %v619_v22 = vld [vmem:[%s1007_s4 + $0x38] sm:$0xff] }
  0x2e   :  { %417 = vperm.xlu1 %759, %v635_v24  }
  0x2f   :  { %412 = vperm.xlu0 %758, %v634_v25  }
  0x81   :  { %v68_v26 = vpop.permute.xlu1 %67 }
  0x82   :  { %v36_v27 = vpop.permute.xlu0 %35  ;;  %v89_v34 = vmul.f32 %v611_v30, %v68_v26 }
  0x83   :  { %v57_v35 = vmul.f32 %v610_v31, %v36_v27 }
  0x85   :  { %v73_v28 = vpop.permute.xlu1 %72  ;;  %v93_v43 = vadd.f32 %v89_v34, %v57_v35 }
  0x86   :  { %v41_v29 = vpop.permute.xlu0 %40  ;;  %v90_v36 = vmul.f32 %v611_v30, %v73_v28 }
  0x87   :  { %v58_v37 = vmul.f32 %v610_v31, %v41_v29 }
  0x89   :  { %v51_v32 = vpop.permute.xlu1 %50  ;;  %v94_v42 = vadd.f32 %v90_v36, %v58_v37 }
  0x8a   :  { %v46_v33 = vpop.permute.xlu0 %45  ;;  %v60_v46 = vmul.f32 %v610_v31, %v51_v32 }
  0x8b   :  { %v59_v47 = vmul.f32 %v610_v31, %v46_v33 }
  0x8d   :  { %v83_v38 = vpop.permute.xlu1 %82 }
  0x8e   :  { %v78_v39 = vpop.permute.xlu0 %77  ;;  %v92_v40 = vmul.f32 %v611_v30, %v83_v38 }
  0x8f   :  { %v91_v41 = vmul.f32 %v611_v30, %v78_v39 }
  0x90   :  { %v96_v50 = vadd.f32 %v92_v40, %v60_v46  ;;  %v819_v46 = vmov 0.0  }
  0x91   :  { %v109_v44 = vpop.permute.xlu1 %108  ;;  %v95_v51 = vadd.f32 %v91_v41, %v59_v47 }
  0x92   :  { %v104_v45 = vpop.permute.xlu0 %103  ;;  %v122_v48 = vadd.f32 %v109_v44, %v94_v42  ;;  %v629_v42 = vld [vmem:[%s1007_s4 + $0x48] sm:$0xff]  ;;  %v631_v44 = vld [vmem:[%s1007_s4 + $0x58] sm:$0xff] }
  0x93   :  { %v121_v49 = vadd.f32 %v104_v45, %v93_v43  ;;  %v630_v43 = vld [vmem:[%s1007_s4 + $0x50] sm:$0xff]  ;;  %v817_v45 = vmov 0.0|0.0  }
  0x94   :  { %760 = vtanh.f32 %v122_v48 }
  0x95   :  { %762 = vtanh.f32 %v121_v49  ;;  %v119_v52 = vpop.permute.xlu1 %118 }
  0x96   :  { %v114_v53 = vpop.permute.xlu0 %113  ;;  %v124_v54 = vadd.f32 %v119_v52, %v96_v50 }
  0x97   :  { %v123_v55 = vadd.f32 %v114_v53, %v95_v51 }
  0x98   :  { %764 = vtanh.f32 %v124_v54 }
  0x99   :  { %766 = vtanh.f32 %v123_v55  ;;  %v145_v2 = vpop.permute.xlu1 %144 }
  0x9a   :  { %v140_v3 = vpop.permute.xlu0 %139 }
  0x9d   :  { %v155_v8 = vpop.permute.xlu1 %154 }
  0x9e   :  { %v761_v56 = vpop.eup %760  ;;  %v150_v10 = vpop.permute.xlu0 %149 }
  0x9f   :  { %v763_v57 = vpop.eup %762 }
  0xa0   :  { %v723_v58 = vpack.c.bf16 %v761_v56, %v763_v57 }
  0xa1   :  { %v277_v24 = vpop.permute.xlu1 %276 }
  0xa2   :  { %v765_v59 = vpop.eup %764  ;;  %724 = vmatprep.subr.bf16.mxu0 %v723_v58  ;;  %v272_v25 = vpop.permute.xlu0 %271 }
  0xa3   :  { %v767_v60 = vpop.eup %766  ;;  %726 = vmatpush3.bf16.msra.mxu0 %v723_v58 }
  0xa4   :  { %v727_v61 = vpack.c.bf16 %v765_v59, %v767_v60 }
  0xa5   :  { %v287_v30 = vpop.permute.xlu1 %286 }
  0xa6   :  { %728 = vmatprep.subr.bf16.mxu0 %v727_v61  ;;  %v282_v32 = vpop.permute.xlu0 %281 }
  0xa7   :  { %730 = vmatpush3.bf16.msra.mxu0 %v727_v61 }
  0xa9   :  { %v408_v47 = vpop.permute.xlu1 %407 }
  0xaa   :  { %679 = vmatmul.mubr.msk.f32.vlgmr.msra.gmra.mrb[0].mxu0 %vm157_vm0, %v130_v62  ;;  %v403_v48 = vpop.permute.xlu0 %402 }
  0xab   :  { %681 = vmatprep.mubr.msk.f32.mxu0 %vm157_vm0, %v131_v63 }
  0xad   :  { %v418_v53 = vpop.permute.xlu1 %417 }
  0xae   :  { %682 = vmatmul.mubr.msk.f32.gmra.mrb[2].mxu0 %vm157_vm0, %v132_v0  ;;  %v413_v55 = vpop.permute.xlu0 %412 }
  0xaf   :  { %706 = vmatprep.mubr.msk.f32.mxu0 %vm157_vm0, %v628_v23 }
 0x17d   :  { %v680_v4 = vpop.f32.mrb[0].mxu0 }
 0x17e   :  { %v242_v5 = vadd.f32 %v680_v4, %v145_v2  ;;  %v236_v6 = vpop.f32.mrb[1].mxu0 }
 0x17f   :  { %v237_v7 = vadd.f32 %v236_v6, %v140_v3 }
 0x180   :  { %768 = vtanh.f32 %v242_v5 }
 0x181   :  { %770 = vtanh.f32 %v237_v7  ;;  %v683_v9 = vpop.f32.mrb[2].mxu0 }
 0x182   :  { %v252_v11 = vadd.f32 %v683_v9, %v155_v8  ;;  %v246_v12 = vpop.f32.mrb[3].mxu0 }
 0x183   :  { %v247_v13 = vadd.f32 %v246_v12, %v150_v10 }
 0x184   :  { %772 = vtanh.f32 %v252_v11 }
 0x185   :  { %774 = vtanh.f32 %v247_v13 }
 0x18a   :  { %v769_v14 = vpop.eup %768 }
 0x18b   :  { %v771_v15 = vpop.eup %770 }
 0x18c   :  { %v731_v16 = vpack.c.bf16 %v769_v14, %v771_v15 }
 0x18e   :  { %v773_v17 = vpop.eup %772  ;;  %732 = vmatprep.subr.bf16.mxu1 %v731_v16 }
 0x18f   :  { %v775_v18 = vpop.eup %774  ;;  %734 = vmatpush3.bf16.msra.mxu1 %v731_v16 }
 0x190   :  { %v735_v19 = vpack.c.bf16 %v773_v17, %v775_v18 }
 0x192   :  { %736 = vmatprep.subr.bf16.mxu1 %v735_v19 }
 0x193   :  { %738 = vmatpush3.bf16.msra.mxu1 %v735_v19 }
 0x194   :  { %747 = vmatprep.subr.bf16.mxu1 %v817_v45 }
 0x196   :  { %693 = vmatmul.mubr.msk.f32.vlgmr.msra.gmra.mrb[0].mxu1 %vm157_vm0, %v617_v20 }
 0x197   :  { %695 = vmatprep.mubr.msk.f32.mxu1 %vm157_vm0, %v618_v21 }
 0x19a   :  { %696 = vmatmul.mubr.msk.f32.gmra.mrb[2].mxu1 %vm157_vm0, %v619_v22 }
 0x19b   :  { %720 = vmatprep.mubr.msk.f32.mxu1 %vm818_vm1, %v819_v46 }
 0x269   :  { %v694_v26 = vpop.f32.mrb[0].mxu1 }
 0x26a   :  { %v373_v27 = vadd.f32 %v694_v26, %v277_v24  ;;  %v367_v28 = vpop.f32.mrb[1].mxu1 }
 0x26b   :  { %v368_v29 = vadd.f32 %v367_v28, %v272_v25 }
 0x26c   :  { %776 = vtanh.f32 %v373_v27 }
 0x26d   :  { %778 = vtanh.f32 %v368_v29  ;;  %v697_v31 = vpop.f32.mrb[2].mxu1 }
 0x26e   :  { %v383_v33 = vadd.f32 %v697_v31, %v287_v30  ;;  %v377_v34 = vpop.f32.mrb[3].mxu1 }
 0x26f   :  { %v378_v35 = vadd.f32 %v377_v34, %v282_v32 }
 0x270   :  { %780 = vtanh.f32 %v383_v33 }
 0x271   :  { %782 = vtanh.f32 %v378_v35 }
 0x276   :  { %v777_v36 = vpop.eup %776 }
 0x277   :  { %v779_v37 = vpop.eup %778 }
 0x278   :  { %v739_v38 = vpack.c.bf16 %v777_v36, %v779_v37 }
 0x27a   :  { %v781_v39 = vpop.eup %780  ;;  %740 = vmatprep.subr.bf16.mxu0 %v739_v38 }
 0x27b   :  { %v783_v40 = vpop.eup %782  ;;  %742 = vmatpush3.bf16.msra.mxu0 %v739_v38 }
 0x27c   :  { %v743_v41 = vpack.c.bf16 %v781_v39, %v783_v40 }
 0x27e   :  { %744 = vmatprep.subr.bf16.mxu0 %v743_v41 }
 0x27f   :  { %746 = vmatpush3.bf16.msra.mxu0 %v743_v41 }
 0x282   :  { %707 = vmatmul.mubr.msk.f32.vlgmr.msra.gmra.mrb[4].mxu0 %vm157_vm0, %v629_v42 }
 0x283   :  { %709 = vmatprep.mubr.msk.f32.mxu0 %vm157_vm0, %v630_v43 }
 0x286   :  { %710 = vmatmul.mubr.msk.f32.gmra.mrb[6].mxu0 %vm157_vm0, %v631_v44 }
 0x355   :  { %v708_v49 = vpop.f32.mrb[4].mxu0 }
 0x356   :  { %v504_v50 = vadd.f32 %v708_v49, %v408_v47  ;;  %v498_v51 = vpop.f32.mrb[5].mxu0 }
 0x357   :  { %v499_v52 = vadd.f32 %v498_v51, %v403_v48 }
 0x358   :  { %784 = vtanh.f32 %v504_v50 }
 0x359   :  { %786 = vtanh.f32 %v499_v52  ;;  %v711_v54 = vpop.f32.mrb[6].mxu0 }
 0x35a   :  { %v514_v56 = vadd.f32 %v711_v54, %v418_v53  ;;  %v508_v57 = vpop.f32.mrb[7].mxu0 }
 0x35b   :  { %v509_v58 = vadd.f32 %v508_v57, %v413_v55 }
 0x35c   :  { %788 = vtanh.f32 %v514_v56 }
 0x35d   :  { %790 = vtanh.f32 %v509_v58 }
 0x362   :  { %v785_v59 = vpop.eup %784 }
 0x363   :  { %v787_v60 = vpop.eup %786 }
 0x364   :  { %v748_v61 = vpack.c.bf16 %v785_v59, %v787_v60 }
 0x366   :  { %v789_v62 = vpop.eup %788  ;;  %749 = vmatpush3.bf16.msra.mxu1 %v748_v61 }
 0x367   :  { %v791_v63 = vpop.eup %790  ;;  %750 = vmatprep.subr.bf16.mxu1 %v817_v45 }
 0x368   :  { %v751_v0 = vpack.c.bf16 %v789_v62, %v791_v63 }
 0x36a   :  { %752 = vmatpush3.bf16.msra.mxu1 %v751_v0 }
 0x36d   :  { %721 = vmatmul.mubr.msk.f32.vlgmr.msra.gmra.mrb[4].mxu1 %vm157_vm0, %v521_v1 }
 0x440   :  { %v591_v2 = vpop.f32.mrb[4].mxu1 }
 0x441   :  { %595 = vst [vmem:[#allocation2] sm:$0x1] %v591_v2  ;;  %v722_v3 = vpop.f32.mrb[5].mxu1 }
 0x442   :  { %803 = shalt.err (!%p800_p4)
}
 0x443   :  { %s804_s6 = scalar_lea.hbm %s1010_s7, 16 }
 0x444   :  { %p805_p5 = scmp.ne.s32.totalorder %s1010_s7, %s804_s6  ;;  %p808_p6 = scmp.lt.u32.totalorder %s804_s6, %s1010_s7 }
 0x446   :  { %p810_p7 = pnand %p808_p6, %p805_p5 }
 0x448   :  { %813 = shalt.err (!%p810_p7)
}
 0x449   :  { %605 = dma.vmem_to_hbm [thread:$0]  %s603_s2, 16, %s1010_s7, [#allocation3]  }
 0x44a   :  { %814 = dma.done.wait [#allocation3], 16  }
 0x44b   :  { %815 = vsyncadd [#allocation3], 4294967280 }
 0x44c   :  { %609 = vsyncpa [#allocation3], 1 }

</bundles_post_ra>
